<compile_context>
chip_gen: v7x
topology: tpu7x:2x2x1
jax: 0.10.0
libtpu: 0.0.40
codegen_flags: <defaults>
</compile_context>

<pallas_src>
import jax
import jax.numpy as jnp
from jax.experimental import pallas as pl
from jax.experimental.pallas import tpu as pltpu


def _dtrelu_kernel(b_ref, x_ref, o_ref):
    x = x_ref[...]                       # (rt, lt), input dtype
    b = b_ref[...]                       # (rt, 1) f32 -> broadcasts over lanes
    keep = jnp.abs(x.astype(jnp.float32)) > b         # threshold compare in f32
    o_ref[...] = jnp.where(keep, x, jnp.zeros((), dtype=x.dtype))


def _cdiv(a, b):
    return -(-a // b)


def dtrelu(x, filters, alpha=8.0 / 255):
    """DTReLU forward. x: (N, C, H, W); filters: (C, Cin, kH, kW)."""
    # The where(|x| > bias, x, 0) rewrite requires bias >= 0.
    assert alpha >= 0, "DTReLU Pallas kernel assumes alpha >= 0 (bias >= 0)"
    N, C, H, W = x.shape
    assert filters.shape[0] == C, "channel mismatch between x and filters"

    # Per-channel bias: tiny loop-invariant reduction, hoisted out of the kernel.
    # Kept in f32 so the compare matches the promoting reference for bf16/fp8 x.
    bias_c = alpha * jnp.sum(jnp.abs(filters.astype(jnp.float32)), axis=(1, 2, 3))  # (C,)

    R, L = N * C, H * W
    x2d = x.reshape(R, L)                                  # free reshape, no copy
    bias_r = jnp.tile(bias_c, N).reshape(R, 1)             # row r = n*C + c -> bias_c[c]

    itemsize = jnp.dtype(x.dtype).itemsize
    sub = {1: 32, 2: 16, 4: 8}.get(itemsize, 8)            # sublane packing unit

    # ---- tile selection: cdiv tiling at fixed targets; edge blocks are masked ----
    rt = R if R <= 512 else 512                            # full-extent rows, or 512 (mult of sub)
    block_budget = 4 * 1024 * 1024                         # ~4 MiB/block; 2x(in+out) ~ 17 MiB
    lane_budget = max(128, (block_budget // max(1, rt * itemsize)) // 128 * 128)
    lt = L if L <= lane_budget else lane_budget            # full extent, or multiple of 128

    n_r, n_l = _cdiv(R, rt), _cdiv(L, lt)

    # v7x: keep >= 2 blocks on a parallel axis so both TensorCores get fed.
    if n_r * n_l == 1:
        lt_half = _cdiv(_cdiv(L, 2), 128) * 128
        if lt_half < L:
            lt, n_l = lt_half, _cdiv(L, lt_half)
        else:
            rt_half = _cdiv(_cdiv(R, 2), sub) * sub
            if rt_half < R:
                rt, n_r = rt_half, _cdiv(R, rt_half)

    out2d = pl.pallas_call(
        _dtrelu_kernel,
        out_shape=jax.ShapeDtypeStruct((R, L), x.dtype),
        grid_spec=pltpu.PrefetchScalarGridSpec(
            num_scalar_prefetch=0,
            grid=(n_r, n_l),                               # lane axis innermost -> bias DMA elided
            in_specs=[
                pl.BlockSpec((rt, 1), lambda i, j: (i, 0)),    # per-row bias (f32)
                pl.BlockSpec((rt, lt), lambda i, j: (i, j)),   # x tile
            ],
            out_specs=pl.BlockSpec((rt, lt), lambda i, j: (i, j)),
        ),
        compiler_params=pltpu.CompilerParams(
            dimension_semantics=("parallel", "parallel"),
            vmem_limit_bytes=32 * 1024 * 1024,
        ),
    )(bias_r, x2d)

    return out2d.reshape(N, C, H, W)


def _dtrelu_ref(x, filters, alpha=8.0 / 255):
    # Direct translation of the PyTorch forward (source of truth).
    bias = alpha * jnp.sum(jnp.abs(filters), axis=(1, 2, 3))[None, :, None, None]
    pos = jax.nn.relu(x - bias)
    neg = jax.nn.relu(-x - bias)
    return pos + bias * jnp.sign(pos) - neg - bias * jnp.sign(neg)


if __name__ == "__main__":
    key = jax.random.PRNGKey(0)
    k1, k2, k3, k4 = jax.random.split(key, 4)

    # Case 1: 128-aligned spatial dims (H*W = 256).
    x = jax.random.normal(k1, (2, 4, 16, 16), dtype=jnp.float32)
    f = 0.1 * jax.random.normal(k2, (4, 4, 3, 3), dtype=jnp.float32)
    out = jax.block_until_ready(dtrelu(x, f))
    assert out.shape == x.shape and out.dtype == x.dtype
    assert jnp.allclose(out, _dtrelu_ref(x, f), atol=1e-5, rtol=1e-5)

    # Case 2: non-128-aligned H*W (225) -> exercises masked ragged-tail blocks
    # with no pad/slice HBM passes.
    x2 = jax.random.normal(k3, (2, 4, 15, 15), dtype=jnp.float32)
    f2 = 0.1 * jax.random.normal(k4, (4, 4, 3, 3), dtype=jnp.float32)
    out2 = jax.block_until_ready(dtrelu(x2, f2))
    assert out2.shape == x2.shape and out2.dtype == x2.dtype
    assert jnp.allclose(out2, _dtrelu_ref(x2, f2), atol=1e-5, rtol=1e-5)

    print("KERNEL_OK")
</pallas_src>

<mosaic_0001>
module attributes {stable_mosaic.version = 11 : i64} {
  func.func @_dtrelu_kernel(%arg0: i32, %arg1: i32, %arg2: memref<8x1xf32, #tpu.memory_space<vmem>>, %arg3: memref<8x128xf32, #tpu.memory_space<vmem>>, %arg4: memref<8x128xf32, #tpu.memory_space<vmem>>) attributes {dimension_semantics = [#tpu.dimension_semantics<parallel>, #tpu.dimension_semantics<parallel>], iteration_bounds = array<i64: 1, 2>, scalar_prefetch = 0 : i64, scratch_operands = 0 : i64, tpu.core_type = #tpu.core_type<tc>, window_params = [{transform_indices = @transform_0, window_bounds = array<i64: 8, 1>}, {transform_indices = @transform_1, window_bounds = array<i64: 8, 128>}, {transform_indices = @transform_2, window_bounds = array<i64: 8, 128>}]} {
    %c0 = arith.constant 0 : index
    %c0_0 = arith.constant 0 : index
    %0 = vector.load %arg3[%c0, %c0_0] : memref<8x128xf32, #tpu.memory_space<vmem>>, vector<8x128xf32>
    %c0_1 = arith.constant 0 : index
    %c0_2 = arith.constant 0 : index
    %1 = vector.load %arg2[%c0_1, %c0_2] : memref<8x1xf32, #tpu.memory_space<vmem>>, vector<8x1xf32>
    %2 = math.absf %0 : vector<8x128xf32>
    %3 = vector.broadcast %1 : vector<8x1xf32> to vector<8x128xf32>
    %4 = arith.cmpf ogt, %2, %3 : vector<8x128xf32>
    %cst = arith.constant 0.000000e+00 : f32
    %5 = vector.broadcast %cst : f32 to vector<8x128xf32>
    %6 = arith.select %4, %0, %5 : vector<8x128xi1>, vector<8x128xf32>
    %c0_3 = arith.constant 0 : index
    %c0_4 = arith.constant 0 : index
    %7 = vector.load %arg4[%c0_3, %c0_4] : memref<8x128xf32, #tpu.memory_space<vmem>>, vector<8x128xf32>
    tpu.vector_store %arg4[%c0_3, %c0_4], %6 {strides = array<i32>} : memref<8x128xf32, #tpu.memory_space<vmem>>, vector<8x128xf32>,
    return
  }
  func.func @transform_0(%arg0: i32, %arg1: i32) -> (i32, i32) {
    %c0_i32 = arith.constant 0 : i32
    %c0_i32_0 = arith.constant 0 : i32
    return %arg0, %c0_i32 : i32, i32
  }
  func.func @transform_1(%arg0: i32, %arg1: i32) -> (i32, i32) {
    %c0_i32 = arith.constant 0 : i32
    return %arg0, %arg1 : i32, i32
  }
  func.func @transform_2(%arg0: i32, %arg1: i32) -> (i32, i32) {
    %c0_i32 = arith.constant 0 : i32
    return %arg0, %arg1 : i32, i32
  }
}

</mosaic_0001>

<bundles_post_ra>
// kernel: tpu_custom_call.1
= control target key start
LH: loop header
LB: loop body
LE: loop exit
PB: predicated region body
PF: predicated region fallthrough
CT: control target
= control target key end

     0   :  { %7 = vsyncpa [#allocation3], 0  ;;  %s703_s0 = inlined_call_operand.vmem [shape: f32[8,1], index: 0, kind: input, shape index: {}]   ;;  %s704_s1 = inlined_call_operand.hbm [shape: f32[8,256], index: 1, kind: input, shape index: {}]   ;;  %s705_s2 = inlined_call_operand.hbm [shape: f32[8,256], index: 2, kind: output, shape index: {}]  }
   0x1   :  { %9 = vsyncpa [#allocation3 + $0x1], 0 }
   0x2   :  { %10 = vsyncpa [#allocation4], 0 }
   0x3   :  { %12 = vsyncpa [#allocation4 + $0x1], 0  ;;  %s528_s9 = smov 0   ;;  %s530_s10 = smov 0  }
   0x4   :  { %s532_s11 = smov 0   ;;  %s534_s12 = smov 0  }
   0x5   :  { %s536_s13 = smov 0   ;;  %s538_s14 = smov 0  }
   0x6 LB: > { %s318_s15 = sadd.s32 4294967295, %s508_s14   ;;  %s319_s16 = sadd.s32 4294967294, %s508_s14   ;;  %s508_s14 = sphi %s538_s14, %s18_s14   ;;  %s504_s13 = sphi %s536_s13, %s721_s13   ;;  %s500_s12 = sphi %s534_s12, %s720_s12   ;;  %s496_s11 = sphi %s532_s11, %s719_s11   ;;  %s492_s10 = sphi %s530_s10, %s718_s10   ;;  %s488_s9 = sphi %s528_s9, %s717_s9  }
   0x7   : > { %s27_s17 = sadd.s32 1, %s504_s13  ;;  %s65_s18 = sadd.s32 1, %s496_s11 }
   0x8   : > { %p28_p0 = scmp.ge.s32.totalorder %s27_s17, 2  ;;  %p72_p1 = scmp.ne.s32.totalorder %s496_s11, %s492_s10 }
   0x9   : > { %p73_p2 = scmp.eq.s32.totalorder %s508_s14, 0  ;;  %p78_p3 = scmp.ne.s32.totalorder %s492_s10, %s488_s9 }
   0xa   : > { %s723_s17 = smov (%p28_p0, %s27_s17), 0  ;;  %p79_p5 = scmp.eq.s32.totalorder %s318_s15, 0 }
   0xb   : > { %p569_p4 = por %p73_p2, %p72_p1  ;;  %s61_s20 = ssub.s32 %s504_s13, %s723_s17 }
   0xc   : > { %p104_p6 = scmp.eq.s32.totalorder %s318_s15, 1  ;;  %p63_p7 = scmp.eq.s32.totalorder %s61_s20, 0 }
   0xd   : > { %p575_p8 = por %p79_p5, %p78_p3  ;;  %p110_p10 = scmp.eq.s32.totalorder %s319_s16, 1 }
   0xe   : > { %p579_p9 = por %p104_p6, %p72_p1  ;;  %p344_p13 = scmp.lt.s32.totalorder %s508_s14, 2 }
   0xf   : > { %s584_s23 = scalar_select %p63_p7, %s496_s11, %s65_s18  }
  0x10   : > { %s709_s22 = scalar_select %p579_p9, 1, 0 }
  0x11   : > { %p586_p11 = por %p110_p10, %p78_p3  ;;  %s137_s25 = sand.u32 1, %s496_s11  }
  0x12   : > { %s323_s26 = sshll.u32 %s137_s25, 3  ;;  %s324_s27 = sshll.u32 %s504_s13, 7 }
  0x13   : > { %s710_s24 = scalar_select %p586_p11, 1, 0 }
  0x14   : > { %s597_s30 = scalar_lea.hbm %s704_s1, %s324_s27  ;;  %s141_s3 = scalar_lea.vmem [#allocation2], %s323_s26 }
  0x15   : > { %s150_s4 = sshll.u32 %s141_s3, 4  ;;  %p603_p0 = pnand %p344_p13, %p569_p4  ;;  %s599_s4 = int_to_ptr.vmem [resolvable:$true] %s150_s4 }
  0x16   : > { %s138_s6 = scalar_lea.sflag [#allocation3], %s137_s25  ;;  %s396_s7 = scalar_lea.hbm %s597_s30, 128 }
  0x17   : > { %p397_p3 = scmp.ne.s32.totalorder %s597_s30, %s396_s7  ;;  %p398_p5 = pneg %p603_p0 }
  0x18   : > { %s401_s16 = scalar_lea.hbm %s704_s1, 256  ;;  %p402_p4 = scmp.lt.u32.totalorder %s597_s30, %s704_s1 }
  0x19   : > { %p399_p6 = pnand %p398_p5, %p397_p3  ;;  %p403_p10 = scmp.lt.u32.totalorder %s401_s16, %s396_s7 }
  0x1a   : > { %p405_p12 = scmp.lt.u32.totalorder %s396_s7, %s597_s30 }
  0x1b   : > { %p400_p7 = pneg %p399_p6  ;;  %p404_p13 = por %p403_p10, %p402_p4 }
  0x1d   : > { %p406_p1 = por %p405_p12, %p404_p13 }
  0x1f   : > { %p407_p2 = pnand %p406_p1, %p400_p7 }
  0x21   : > { %410 = shalt.err (!%p407_p2)
}
  0x22   : > { %s411_s20 = scalar_lea.vmem %s599_s4, 128  ;;  %s510_s25 = smov [#allocation2]  }
  0x23   : > { %p412_p3 = scmp.ne.s32.totalorder %s599_s4, %s411_s20  ;;  %s416_s26 = sshll.u32 %s510_s25, 4  ;;  %s417_s26 = int_to_ptr.vmem [resolvable:$false] %s416_s26 }
  0x24   : > { %s418_s27 = scalar_lea.vmem %s417_s26, 256  ;;  %p419_p9 = scmp.lt.s32.totalorder %s599_s4, %s417_s26 }
  0x25   : > { %p414_p6 = pnand %p412_p3, %p398_p5  ;;  %p420_p4 = scmp.lt.s32.totalorder %s418_s27, %s411_s20 }
  0x27   : > { %p415_p11 = pneg %p414_p6  ;;  %p421_p10 = por %p420_p4, %p419_p9 }
  0x29   : > { %p422_p12 = pnand %p421_p10, %p415_p11 }
  0x2b   : > { %425 = shalt.err (!%p422_p12)
}
  0x2c   : > { %339 = dma.hbm_to_vmem [thread:$0]  (!%p603_p0), %s597_s30, 128, %s599_s4, %s138_s6  }
  0x2d   : > { %p712_p1 = scmp.lt.s32.totalorder %s508_s14, 3  ;;  %p713_p2 = scmp.ge.s32.totalorder %s508_s14, 1 }
  0x2f   : > { %p156_p5 = pnand %p713_p2, %p712_p1 }
  0x30   : > { %s639_s28 = sand.u32 (!%p156_p5), 1, %s492_s10  }
  0x31   : > { %159 = sbr.rel (%p156_p5) target bundleno = 203 (0xcb), region = 28  ;;  %s326_s29 = sshll.u32 (!%p156_p5), %s639_s28, 3 }
  0x32   : > { %s162_s3 = scalar_lea.sflag (!%p156_p5), [#allocation3], %s639_s28  ;;  %s165_s7 = scalar_lea.vmem (!%p156_p5), [#allocation2], %s326_s29 }
  0x38   : > { %479 = dma.done.wait (%p575_p8), %s162_s3, 128  }
  0x39   : > { %481 = vsyncadd (%p575_p8), %s162_s3, 4294967168  ;;  %v511_v0 = vmov 0   ;;  %v195_v1 = vld [vmem:[%s703_s0] sm:$0xff]  ;;  %s329_s5 = sshll.u32 %s500_s12, 7  ;;  %s189_s6 = scalar_lea.vmem [#allocation5], %s326_s29 }
  0x3a   : > { %395 = vset.pattern.permute.xlu0 %v511_v0  ;;  %v194_v2 = vld [vmem:[%s165_s7] sm:$0xff]  ;;  %s221_s8 = sshll.u32 %s189_s6, 4  ;;  %s654_s16 = scalar_lea.hbm %s705_s2, %s329_s5  ;;  %s656_s8 = int_to_ptr.vmem [resolvable:$true] %s221_s8 }
  0x3b   : > { %199 = vperm.xlu0 %395, %v195_v1   ;;  %v196_v3 = vand.u32 2147483647, %v194_v2  ;;  %s206_s18 = scalar_lea.sflag [#allocation4], %s639_s28  ;;  %s426_s19 = scalar_lea.vmem %s656_s8, 128 }
  0x3c   : > { %p427_p8 = scmp.ne.s32.totalorder %s656_s8, %s426_s19  ;;  %p714_p9 = scmp.ne.s32.totalorder %s709_s22, 0 }
  0x3d   : > { %s512_s12 = smov [#allocation5]  }
  0x3e   : > { %p428_p11 = pnand %p427_p8, %p714_p9  ;;  %s430_s20 = sshll.u32 %s512_s12, 4  ;;  %s431_s20 = int_to_ptr.vmem [resolvable:$false] %s430_s20 }
  0x3f   : > { %s432_s25 = scalar_lea.vmem %s431_s20, 256  ;;  %p433_p7 = scmp.lt.s32.totalorder %s656_s8, %s431_s20 }
  0x40   : > { %p429_p0 = pneg %p428_p11  ;;  %p434_p13 = scmp.lt.s32.totalorder %s432_s25, %s426_s19 }
  0x42   : > { %p435_p3 = por %p434_p13, %p433_p7 }
  0x44   : > { %p436_p6 = pnand %p435_p3, %p429_p0 }
  0xba   : > { %v200_v4 = vpop.permute.xlu0 %199 }
  0xbb   : > { %vm202_vm0 = vcmp.gt.f32.partialorder %v196_v3, %v200_v4 }
  0xbc   : > { %v203_v5 = vsel %vm202_vm0, %v194_v2, 0.0 }
  0xbd   : > { %204 = vst [vmem:[%s189_s6] sm:$0xff] %v203_v5 }
  0xbe   : > { %439 = shalt.err (!%p436_p6)
}
  0xbf   : > { %s440_s26 = scalar_lea.hbm %s654_s16, 128  ;;  %s444_s29 = scalar_lea.hbm %s705_s2, 256 }
  0xc0   : > { %p441_p4 = scmp.ne.s32.totalorder %s654_s16, %s440_s26  ;;  %p445_p1 = scmp.lt.u32.totalorder %s654_s16, %s705_s2 }
  0xc1   : > { %p446_p2 = scmp.lt.u32.totalorder %s444_s29, %s440_s26  ;;  %p448_p8 = scmp.lt.u32.totalorder %s440_s26, %s654_s16 }
  0xc2   : > { %p442_p10 = pnand %p441_p4, %p714_p9 }
  0xc3   : > { %p447_p5 = por %p446_p2, %p445_p1 }
  0xc4   : > { %p443_p12 = pneg %p442_p10 }
  0xc5   : > { %p449_p11 = por %p448_p8, %p447_p5 }
  0xc7   : > { %p450_p0 = pnand %p449_p11, %p443_p12 }
  0xc9   : > { %453 = shalt.err (!%p450_p0)
}
  0xca   : > { %334 = dma.vmem_to_hbm [thread:$0]  (%p714_p9), %s656_s8, 128, %s654_s16, %s206_s18  }
  0xcb PF: > { %s233_s30 = sand.u32 1, %s488_s9   ;;  %p715_p7 = scmp.ne.s32.totalorder %s710_s24, 0 }
  0xcc   : > { %p716_p13 = scmp.ge.s32.totalorder %s508_s14, 2  ;;  %s234_s4 = scalar_lea.sflag [#allocation4], %s233_s30 }
  0xce   : > { %p341_p3 = pnand %p716_p13, %p715_p7 }
  0xd0   : > { %483 = dma.done.wait (!%p341_p3), %s234_s4, 128  }
  0xd1   : > { %485 = vsyncadd (!%p341_p3), %s234_s4, 4294967168  ;;  %s18_s14 = sadd.s32 1, %s508_s14   ;;  %s717_s9 = smov %s492_s10 }
  0xd2   : > { %p15_p6 = scmp.ge.s32.totalorder %s18_s14, 4   ;;  %s718_s10 = smov %s496_s11 }
  0xd3   : > { %s719_s11 = smov %s584_s23  ;;  %s720_s12 = smov %s504_s13 }
  0xd4   : > { %s721_s13 = smov %s723_s17  ;;  %17 = sbr.rel (!%p15_p6) target bundleno = 6 (0x6), region = 76 }
  0xdb   :  { %239 = vsyncpa [#allocation3], 1 }
  0xdc   :  { %241 = vsyncpa [#allocation3 + $0x1], 1 }
  0xdd   :  { %242 = vsyncpa [#allocation4], 1 }
  0xde   :  { %244 = vsyncpa [#allocation4 + $0x1], 1 }

</bundles_post_ra>
